<compile_context>
chip_gen: v7x
topology: tpu7x:2x2x1
jax: 0.10.0
libtpu: 0.0.40
codegen_flags: <defaults>
</compile_context>

<pallas_src>
import functools

import jax
import jax.numpy as jnp
from jax.experimental import pallas as pl
from jax.experimental.pallas import tpu as pltpu


ATTENTION_DIM = 128
HIDDEN_DIM = 256
NUM_CLASSES = 3
OUT_PAD = 128          # lane-dense padded output width (multiple of 128)


def _round_up(x, m):
    return ((x + m - 1) // m) * m


def _fused_bottleneck_kernel(x1_ref, x2_ref, m_ref, b1_ref, w2_ref, b2_ref,
                             out_ref):
    # One layer-1 MXU pass over the concatenated (TB, D1+D2) tile.
    x = jnp.concatenate([x1_ref[...], x2_ref[...]], axis=-1)
    h = jnp.dot(x, m_ref[...], preferred_element_type=jnp.float32) + b1_ref[...]
    # relu, then bf16 so layer 2 is an MXU-native bf16 matmul.
    h = jnp.maximum(h, 0.0).astype(jnp.bfloat16)
    logits = (jnp.dot(h, w2_ref[...], preferred_element_type=jnp.float32)
              + b2_ref[...])
    out_ref[...] = logits.astype(out_ref.dtype)   # lane-dense bf16 store


def attention_bottleneck_forward(x1, x2, params, *, block_b=4096):
    """x1: (B, D1), x2: (B, D2) float32. Returns logits (B, NUM_CLASSES) bf16.

    block_b: batch-tile size. 2048-4096 works on all generations (per-row
    footprint is <1 KB); it is reduced automatically only so the grid has at
    least 2 steps (v7x 2-TC sharding of the "parallel" batch axis).
    """
    B, D1 = x1.shape
    _, D2 = x2.shape

    # --- one-time algebraic fold (wrapper, plain XLA, HIGHEST precision) -----
    HI = jax.lax.Precision.HIGHEST
    w_fc1 = params["w_fc1"]                       # (2A, H)
    w_fc1a = w_fc1[:ATTENTION_DIM, :]             # (A, H)
    w_fc1b = w_fc1[ATTENTION_DIM:, :]             # (A, H)
    m = jnp.concatenate(
        [jnp.dot(params["wv1"], w_fc1a, precision=HI),    # (D1, H)
         jnp.dot(params["wv2"], w_fc1b, precision=HI)],   # (D2, H)
        axis=0)                                            # (D1+D2, H)
    b1 = (jnp.dot(params["bv1"], w_fc1a, precision=HI)
          + jnp.dot(params["bv2"], w_fc1b, precision=HI)
          + params["b_fc1"])                               # (1, H)

    # lane-dense fc2: pad 3 -> OUT_PAD output columns; bf16 for MXU-native dot.
    w2 = jnp.zeros((HIDDEN_DIM, OUT_PAD), jnp.float32).at[:, :NUM_CLASSES].set(
        params["w_fc2"]).astype(jnp.bfloat16)
    b2 = jnp.zeros((1, OUT_PAD), jnp.float32).at[:, :NUM_CLASSES].set(
        params["b_fc2"])

    # --- batch tiling (no full-tile padding) ----------------------------------
    Bp = _round_up(B, 8)                 # sublane alignment only
    if Bp != B:                          # at most 7 extra rows
        x1 = jnp.pad(x1, ((0, Bp - B), (0, 0)))
        x2 = jnp.pad(x2, ((0, Bp - B), (0, 0)))

    TB = _round_up(min(block_b, Bp), 8)
    if Bp <= TB and Bp >= 16:
        # A single tile would cover the whole batch; split so the "parallel"
        # grid axis has >=2 steps (v7x 2nd TensorCore gets work).
        TB = _round_up(pl.cdiv(Bp, 2), 8)
    grid = (pl.cdiv(Bp, TB),)            # partial last block handled by Pallas

    out = pl.pallas_call(
        _fused_bottleneck_kernel,
        out_shape=jax.ShapeDtypeStruct((Bp, OUT_PAD), jnp.bfloat16),
        grid_spec=pltpu.PrefetchScalarGridSpec(
            num_scalar_prefetch=0,
            grid=grid,
            in_specs=[
                pl.BlockSpec((TB, D1), lambda i: (i, 0)),            # x1 tile
                pl.BlockSpec((TB, D2), lambda i: (i, 0)),            # x2 tile
                pl.BlockSpec((D1 + D2, HIDDEN_DIM), lambda i: (0, 0)),  # M
                pl.BlockSpec((1, HIDDEN_DIM), lambda i: (0, 0)),     # b'
                pl.BlockSpec((HIDDEN_DIM, OUT_PAD), lambda i: (0, 0)),  # W2 pad
                pl.BlockSpec((1, OUT_PAD), lambda i: (0, 0)),        # b2 pad
            ],
            out_specs=pl.BlockSpec((TB, OUT_PAD), lambda i: (i, 0)),
        ),
        compiler_params=pltpu.CompilerParams(
            dimension_semantics=("parallel",),   # batch tiles shard on v7x 2-TC
        ),
    )(x1, x2, m, b1, w2, b2)

    return out[:B, :NUM_CLASSES]


def init_params(key, d1, d2):
    """Deterministic parameter init. Weights stored as (in, out) = PyTorch W^T."""
    ks = jax.random.split(key, 16)

    def lin(kw, kb, fan_in, fan_out):
        bound = 1.0 / jnp.sqrt(jnp.float32(fan_in))
        w = jax.random.uniform(kw, (fan_in, fan_out), jnp.float32, -bound, bound)
        b = jax.random.uniform(kb, (1, fan_out), jnp.float32, -bound, bound)
        return w, b

    p = {}
    p["wq1"], p["bq1"] = lin(ks[0], ks[1], d1, ATTENTION_DIM)
    p["wk1"], p["bk1"] = lin(ks[2], ks[3], d1, ATTENTION_DIM)
    p["wv1"], p["bv1"] = lin(ks[4], ks[5], d1, ATTENTION_DIM)
    p["wq2"], p["bq2"] = lin(ks[6], ks[7], d2, ATTENTION_DIM)
    p["wk2"], p["bk2"] = lin(ks[8], ks[9], d2, ATTENTION_DIM)
    p["wv2"], p["bv2"] = lin(ks[10], ks[11], d2, ATTENTION_DIM)
    p["w_fc1"], p["b_fc1"] = lin(ks[12], ks[13], 2 * ATTENTION_DIM, HIDDEN_DIM)
    p["w_fc2"], p["b_fc2"] = lin(ks[14], ks[15], HIDDEN_DIM, NUM_CLASSES)
    return p


def reference_forward(x1, x2, p):
    """Pure-JAX reference mirroring the PyTorch forward exactly (incl. seq dim,
    Q/K projections, scaling, and softmax)."""
    def attn(q, k, v):
        scores = jnp.matmul(q, jnp.swapaxes(k, -2, -1)) / jnp.sqrt(
            jnp.float32(ATTENTION_DIM))
        w = jax.nn.softmax(scores, axis=-1)
        return jnp.matmul(w, v)

    q1 = (x1 @ p["wq1"] + p["bq1"])[:, None, :]
    k1 = (x1 @ p["wk1"] + p["bk1"])[:, None, :]
    v1 = (x1 @ p["wv1"] + p["bv1"])[:, None, :]
    a1 = attn(q1, k1, v1)[:, 0, :]

    q2 = (x2 @ p["wq2"] + p["bq2"])[:, None, :]
    k2 = (x2 @ p["wk2"] + p["bk2"])[:, None, :]
    v2 = (x2 @ p["wv2"] + p["bv2"])[:, None, :]
    a2 = attn(q2, k2, v2)[:, 0, :]

    comb = jnp.concatenate([a1, a2], axis=1)
    h = jax.nn.relu(comb @ p["w_fc1"] + p["b_fc1"])
    return h @ p["w_fc2"] + p["b_fc2"]


if __name__ == "__main__":
    B, D1, D2 = 2, 16, 32
    key = jax.random.PRNGKey(0)
    kx1, kx2, kp = jax.random.split(key, 3)

    x1 = jax.random.uniform(kx1, (B, D1), jnp.float32)
    x2 = jax.random.uniform(kx2, (B, D2), jnp.float32)
    params = init_params(kp, D1, D2)

    fwd = jax.jit(functools.partial(attention_bottleneck_forward, block_b=4096))
    logits = jax.block_until_ready(fwd(x1, x2, params))

    ref = reference_forward(x1, x2, params)
    assert logits.shape == (B, NUM_CLASSES), logits.shape
    # bf16 output/layer-2 (per perf review) -> compare at bf16-appropriate tol.
    assert jnp.allclose(logits.astype(jnp.float32), ref, atol=2e-2, rtol=2e-2), (
        logits, ref)

    print("KERNEL_OK")
</pallas_src>

<mosaic_0001>
module attributes {stable_mosaic.version = 11 : i64} {
  func.func @_fused_bottleneck_kernel(%arg0: i32, %arg1: memref<8x16xf32, #tpu.memory_space<vmem>>, %arg2: memref<8x32xf32, #tpu.memory_space<vmem>>, %arg3: memref<48x256xf32, #tpu.memory_space<vmem>>, %arg4: memref<1x256xf32, #tpu.memory_space<vmem>>, %arg5: memref<256x128xbf16, #tpu.memory_space<vmem>>, %arg6: memref<1x128xf32, #tpu.memory_space<vmem>>, %arg7: memref<8x128xbf16, #tpu.memory_space<vmem>>) attributes {dimension_semantics = [#tpu.dimension_semantics<parallel>], iteration_bounds = array<i64: 1>, scalar_prefetch = 0 : i64, scratch_operands = 0 : i64, tpu.core_type = #tpu.core_type<tc>, window_params = [{transform_indices = @transform_0, window_bounds = array<i64: 8, 16>}, {transform_indices = @transform_1, window_bounds = array<i64: 8, 32>}, {pipeline_mode = #tpu.pipeline_mode<synchronous>, transform_indices = @transform_2, window_bounds = array<i64: 48, 256>}, {pipeline_mode = #tpu.pipeline_mode<synchronous>, transform_indices = @transform_3, window_bounds = array<i64: 1, 256>}, {pipeline_mode = #tpu.pipeline_mode<synchronous>, transform_indices = @transform_4, window_bounds = array<i64: 256, 128>}, {pipeline_mode = #tpu.pipeline_mode<synchronous>, transform_indices = @transform_5, window_bounds = array<i64: 1, 128>}, {transform_indices = @transform_6, window_bounds = array<i64: 8, 128>}]} {
    %c0 = arith.constant 0 : index
    %c0_0 = arith.constant 0 : index
    %0 = vector.load %arg1[%c0, %c0_0] : memref<8x16xf32, #tpu.memory_space<vmem>>, vector<8x16xf32>
    %c0_1 = arith.constant 0 : index
    %c0_2 = arith.constant 0 : index
    %1 = vector.load %arg2[%c0_1, %c0_2] : memref<8x32xf32, #tpu.memory_space<vmem>>, vector<8x32xf32>
    %2 = tpu.concatenate %0, %1 in 1 : vector<8x16xf32>, vector<8x32xf32> -> vector<8x48xf32>
    %c0_3 = arith.constant 0 : index
    %c0_4 = arith.constant 0 : index
    %3 = vector.load %arg3[%c0_3, %c0_4] : memref<48x256xf32, #tpu.memory_space<vmem>>, vector<48x256xf32>
    %cst = arith.constant dense<0.000000e+00> : vector<8x256xf32>
    %4 = tpu.matmul %2, %3, %cst {dimension_numbers = #tpu.dot_dimension_numbers<[1], [0], [0], [1], [0, 0, 1, 1], [], []>} : vector<8x48xf32>, vector<48x256xf32>, vector<8x256xf32> -> vector<8x256xf32>
    %c0_5 = arith.constant 0 : index
    %c0_6 = arith.constant 0 : index
    %5 = vector.load %arg4[%c0_5, %c0_6] : memref<1x256xf32, #tpu.memory_space<vmem>>, vector<1x256xf32>
    %6 = vector.broadcast %5 : vector<1x256xf32> to vector<8x256xf32>
    %7 = arith.addf %4, %6 : vector<8x256xf32>
    %cst_7 = arith.constant 0.000000e+00 : f32
    %8 = vector.broadcast %cst_7 : f32 to vector<8x256xf32>
    %9 = arith.maximumf %7, %8 : vector<8x256xf32>
    %10 = arith.truncf %9 : vector<8x256xf32> to vector<8x256xbf16>
    %c0_8 = arith.constant 0 : index
    %c0_9 = arith.constant 0 : index
    %11 = vector.load %arg5[%c0_8, %c0_9] : memref<256x128xbf16, #tpu.memory_space<vmem>>, vector<256x128xbf16>
    %cst_10 = arith.constant dense<0.000000e+00> : vector<8x128xf32>
    %12 = tpu.matmul %10, %11, %cst_10 {dimension_numbers = #tpu.dot_dimension_numbers<[1], [0], [0], [1], [0, 0, 1, 1], [], []>} : vector<8x256xbf16>, vector<256x128xbf16>, vector<8x128xf32> -> vector<8x128xf32>
    %c0_11 = arith.constant 0 : index
    %c0_12 = arith.constant 0 : index
    %13 = vector.load %arg6[%c0_11, %c0_12] : memref<1x128xf32, #tpu.memory_space<vmem>>, vector<1x128xf32>
    %14 = vector.broadcast %13 : vector<1x128xf32> to vector<8x128xf32>
    %15 = arith.addf %12, %14 : vector<8x128xf32>
    %16 = arith.truncf %15 : vector<8x128xf32> to vector<8x128xbf16>
    %c0_13 = arith.constant 0 : index
    %c0_14 = arith.constant 0 : index
    %17 = vector.load %arg7[%c0_13, %c0_14] : memref<8x128xbf16, #tpu.memory_space<vmem>>, vector<8x128xbf16>
    tpu.vector_store %arg7[%c0_13, %c0_14], %16 {strides = array<i32>} : memref<8x128xbf16, #tpu.memory_space<vmem>>, vector<8x128xbf16>,
    return
  }
  func.func @transform_0(%arg0: i32) -> (i32, i32) {
    %c0_i32 = arith.constant 0 : i32
    %c0_i32_0 = arith.constant 0 : i32
    return %arg0, %c0_i32 : i32, i32
  }
  func.func @transform_1(%arg0: i32) -> (i32, i32) {
    %c0_i32 = arith.constant 0 : i32
    %c0_i32_0 = arith.constant 0 : i32
    return %arg0, %c0_i32 : i32, i32
  }
  func.func @transform_2(%arg0: i32) -> (i32, i32) {
    %c0_i32 = arith.constant 0 : i32
    %c0_i32_0 = arith.constant 0 : i32
    %c0_i32_1 = arith.constant 0 : i32
    return %c0_i32, %c0_i32_0 : i32, i32
  }
  func.func @transform_3(%arg0: i32) -> (i32, i32) {
    %c0_i32 = arith.constant 0 : i32
    %c0_i32_0 = arith.constant 0 : i32
    %c0_i32_1 = arith.constant 0 : i32
    return %c0_i32, %c0_i32_0 : i32, i32
  }
  func.func @transform_4(%arg0: i32) -> (i32, i32) {
    %c0_i32 = arith.constant 0 : i32
    %c0_i32_0 = arith.constant 0 : i32
    %c0_i32_1 = arith.constant 0 : i32
    return %c0_i32, %c0_i32_0 : i32, i32
  }
  func.func @transform_5(%arg0: i32) -> (i32, i32) {
    %c0_i32 = arith.constant 0 : i32
    %c0_i32_0 = arith.constant 0 : i32
    %c0_i32_1 = arith.constant 0 : i32
    return %c0_i32, %c0_i32_0 : i32, i32
  }
  func.func @transform_6(%arg0: i32) -> (i32, i32) {
    %c0_i32 = arith.constant 0 : i32
    %c0_i32_0 = arith.constant 0 : i32
    return %arg0, %c0_i32 : i32, i32
  }
}

</mosaic_0001>

<bundles_post_ra>
// kernel: attention_bottleneck_forward.1
= control target key start
LH: loop header
LB: loop body
LE: loop exit
PB: predicated region body
PF: predicated region fallthrough
CT: control target
= control target key end

     0   :  { %v386_v3 = vmov 0.0   ;;  %s387_s27 = smov 16   ;;  %vm30_vm0 = vcmask 130048   ;;  %vm56_vm1 = vcmask 392192   ;;  %v46_v39 = vlaneseq  ;;  %s522_s1 = inlined_call_operand.vmem [shape: f32[8,32], index: 1, kind: input, shape index: {}]   ;;  %s523_s2 = inlined_call_operand.vmem [shape: f32[48,256], index: 2, kind: input, shape index: {}]   ;;  %s524_s4 = inlined_call_operand.vmem [shape: bf16[256,128], index: 4, kind: input, shape index: {}]   ;;  %s525_s0 = inlined_call_operand.vmem [shape: f32[8,16], index: 0, kind: input, shape index: {}]   ;;  %s526_s3 = inlined_call_operand.vmem [shape: f32[1,256], index: 3, kind: input, shape index: {}]   ;;  %s527_s5 = inlined_call_operand.vmem [shape: f32[1,128], index: 5, kind: input, shape index: {}]   ;;  %s528_s6 = inlined_call_operand.vmem [shape: bf16[8,128], index: 6, kind: output, shape index: {}]  }
   0x1   :  { %v25_v0 = vld [vmem:[%s522_s1] sm:$0xff]  ;;  %v33_v1 = vld [vmem:[%s523_s2 + $0x8] sm:$0xff]  ;;  %v35_v2 = vld [vmem:[%s523_s2 + $0x18] sm:$0xff]  ;;  %124 = vmatprep.mubr.f32.mxu0 %v386_v3 }
   0x2   :  { %27 = vrot.lane.b32.xlu0 %v25_v0, %s387_s27  ;;  %v356_v4 = vpack.c.bf16 %v35_v2, %v33_v1  ;;  %v32_v5 = vld [vmem:[%s523_s2] sm:$0xff]  ;;  %v34_v6 = vld [vmem:[%s523_s2 + $0x10] sm:$0xff]  ;;  %v37_v7 = vld [vmem:[%s523_s2 + $0x28] sm:$0xff]  ;;  %v47_v40 = vshrl.u32 %v46_v39, 7 }
   0x3   :  { %v358_v8 = vpack.c.bf16 %v34_v6, %v32_v5  ;;  %v39_v9 = vld [vmem:[%s523_s2 + $0x38] sm:$0xff]  ;;  %v36_v10 = vld [vmem:[%s523_s2 + $0x20] sm:$0xff]  ;;  %v38_v11 = vld [vmem:[%s523_s2 + $0x30] sm:$0xff] }
   0x4   :  { %357 = vmatprep.subr.bf16.mxu0 %v356_v4  ;;  %v360_v12 = vpack.c.bf16 %v39_v9, %v37_v7  ;;  %v41_v13 = vld [vmem:[%s523_s2 + $0x48] sm:$0xff]  ;;  %v43_v14 = vld [vmem:[%s523_s2 + $0x58] sm:$0xff]  ;;  %v362_v15 = vpack.c.bf16 %v38_v11, %v36_v10  ;;  %v40_v16 = vld [vmem:[%s523_s2 + $0x40] sm:$0xff]  ;;  %v48_v41 = vsub.s32 0, %v47_v40  ;;  %v52_v43 = vsub.s32 1, %v47_v40 }
   0x5   :  { %359 = vmatpush1.bf16.msra.mxu0 %v358_v8  ;;  %v42_v17 = vld [vmem:[%s523_s2 + $0x50] sm:$0xff]  ;;  %v364_v18 = vpack.c.bf16 %v43_v14, %v41_v13  ;;  %v370_v19 = vld [vmem:[%s524_s4 + $0x40] sm:$0xff]   ;;  %v372_v21 = vld [vmem:[%s524_s4 + $0x48] sm:$0xff]  }
   0x6   :  { %361 = vmatprep.subr.bf16.mxu0 %v360_v12  ;;  %v371_v20 = vld [vmem:[%s524_s4] sm:$0xff]   ;;  %334 = vmatprep.subr.bf16.mxu1 %v370_v19  ;;  %v366_v22 = vpack.c.bf16 %v42_v17, %v40_v16  ;;  %v373_v23 = vld [vmem:[%s524_s4 + $0x8] sm:$0xff]   ;;  %v374_v24 = vld [vmem:[%s524_s4 + $0x50] sm:$0xff]  }
   0x7   :  { %335 = vmatpush3.bf16.msra.mxu1 %v371_v20  ;;  %v375_v25 = vld [vmem:[%s524_s4 + $0x10] sm:$0xff]   ;;  %v376_v26 = vld [vmem:[%s524_s4 + $0x58] sm:$0xff]   ;;  %v378_v28 = vld [vmem:[%s524_s4 + $0x60] sm:$0xff]  }
   0x8   :  { %336 = vmatprep.subr.bf16.mxu1 %v372_v21  ;;  %v377_v27 = vld [vmem:[%s524_s4 + $0x18] sm:$0xff]   ;;  %v379_v29 = vld [vmem:[%s524_s4 + $0x20] sm:$0xff]   ;;  %v380_v30 = vld [vmem:[%s524_s4 + $0x68] sm:$0xff]  }
   0x9   :  { %363 = vmatpush1.bf16.msra.mxu0 %v362_v15  ;;  %v381_v31 = vld [vmem:[%s524_s4 + $0x28] sm:$0xff]   ;;  %v24_v32 = vld [vmem:[%s525_s0] sm:$0xff]  ;;  %v382_v35 = vld [vmem:[%s524_s4 + $0x70] sm:$0xff]  }
   0xa   :  { %365 = vmatprep.subr.bf16.mxu0 %v364_v18  ;;  %v383_v36 = vld [vmem:[%s524_s4 + $0x30] sm:$0xff]   ;;  %v384_v37 = vld [vmem:[%s524_s4 + $0x78] sm:$0xff]   ;;  %v44_v42 = vld [vmem:[%s526_s3] sm:$0x3] }
   0xb   :  { %337 = vmatpush3.bf16.msra.mxu1 %v373_v23  ;;  %v385_v38 = vld [vmem:[%s524_s4 + $0x38] sm:$0xff]   ;;  %v49_v44 = vrot.slane %v44_v42, %v48_v41  ;;  %v53_v45 = vrot.slane %v44_v42, %v52_v43  ;;  %v317_v55 = vld [vmem:[%s527_s5] ss:$0 sm:$0xff] }
   0xc   :  { %338 = vmatprep.subr.bf16.mxu1 %v374_v24 }
   0xd   :  { %367 = vmatpush1.bf16.msra.mxu0 %v366_v22 }
   0xf   :  { %339 = vmatpush3.bf16.msra.mxu1 %v375_v25 }
  0x10   :  { %340 = vmatprep.subr.bf16.mxu1 %v376_v26 }
  0x13   :  { %341 = vmatpush3.bf16.msra.mxu1 %v377_v27 }
  0x14   :  { %342 = vmatprep.subr.bf16.mxu1 %v378_v28 }
  0x17   :  { %343 = vmatpush3.bf16.msra.mxu1 %v379_v29 }
  0x18   :  { %344 = vmatprep.subr.bf16.mxu1 %v380_v30 }
  0x1b   :  { %345 = vmatpush3.bf16.msra.mxu1 %v381_v31 }
  0x1c   :  { %346 = vmatprep.subr.bf16.mxu1 %v382_v35 }
  0x1f   :  { %347 = vmatpush3.bf16.msra.mxu1 %v383_v36 }
  0x20   :  { %348 = vmatprep.subr.bf16.mxu1 %v384_v37 }
  0x23   :  { %349 = vmatpush3.bf16.msra.mxu1 %v385_v38 }
  0x74   :  { %v28_v33 = vpop.permute.xlu0 %27 }
  0x75   :  { %v31_v34 = vsel %vm30_vm0, %v24_v32, %v28_v33 }
  0x76   :  { %316 = vmatmul.mubr.msk.f32.vlgmr.msra.gmra.mrb[0].mxu0 %vm56_vm1, %v31_v34 }
 0x149   :  { %v126_v46 = vpop.f32.mrb[0].mxu0 }
 0x14a   :  { %v127_v47 = vadd.f32 %v126_v46, %v49_v44  ;;  %v128_v48 = vpop.f32.mrb[1].mxu0 }
 0x14b   :  { %v129_v49 = vadd.f32 %v128_v48, %v53_v45 }
 0x14c   :  { %v131_v50 = vmax.f32 %v127_v47, 0.0 }
 0x14d   :  { %v132_v51 = vmax.f32 %v129_v49, 0.0 }
 0x14e   :  { %v133_v53 = vpack.c.bf16 %v131_v50, %v131_v50 }
 0x14f   :  { %v134_v52 = vpack.c.bf16 %v132_v51, %v132_v51 }
 0x151   :  { %302 = vmatprep.mubr.bf16.mxu1 %v134_v52 }
 0x152   :  { %303 = vmatmul.mubr.bf16.vlgmr.msra.gmra.mrb[0].mxu1 %v133_v53 }
 0x225   :  { %v350_v54 = vpop.f32.mrb[0].mxu1 }
 0x226   :  { %v351_v56 = vpop.f32.mrb[1].mxu1 }
 0x227   :  { %v352_v57 = vadd.f32 %v351_v56, %v350_v54  ;;  %v353_v58 = vpop.f32.mrb[2].mxu1 }
 0x228   :  { %v354_v59 = vpop.f32.mrb[3].mxu1 }
 0x229   :  { %v305_v60 = vadd.f32 %v352_v57, %v317_v55 }
 0x22b   :  { %v310_v61 = vpack.c.bf16 %v305_v60, %v305_v60 }
 0x22d   :  { %311 = vst [vmem:[%s528_s6] sm:$0xf] %v310_v61 }

</bundles_post_ra>
